<compile_context>
chip_gen: v7x
topology: tpu7x:2x2x1
jax: 0.10.0
libtpu: 0.0.40
codegen_flags: <defaults>
</compile_context>

<pallas_src>
import functools

import jax
import jax.numpy as jnp
from jax.experimental import pallas as pl
from jax.experimental.pallas import tpu as pltpu

NEG_INF = -1e30
LEAKY_SLOPE = 0.2      # PyG GATConv default negative_slope
LANE = 128
SUBLANE = 8


def _round_up(v, m):
    return ((v + m - 1) // m) * m


def _pad2(a, rows, cols):
    return jnp.pad(a, ((0, rows - a.shape[0]), (0, cols - a.shape[1])))


def _vmem_budgets():
    """Generation-aware VMEM sizing (v7x: 64 MiB/TC, v5e/v6e: 128 MiB)."""
    try:
        cap = int(pltpu.get_tpu_info().vmem_capacity_bytes)
    except Exception:                      # unknown backend / runtime -> conservative default
        cap = 64 * 1024 * 1024
    vmem_limit = min(int(cap * 0.8), 100 * 1024 * 1024)
    tile_budget = cap // 2                 # headroom for compiler scratch / pipeline buffers
    return vmem_limit, tile_budget


def _pick_dst_tile(n_pad, heads, vmem_budget):
    """Largest dst-row tile whose working set fits the budget (multiple of 32, <=512)."""
    # resident (tile-independent): stacked h' (bf16, lane-padded to 128 lanes, x2 buffers)
    # + alpha^T rows (padded to 8 sublanes)
    resident = 2 * heads * n_pad * LANE * 2 + 2 * SUBLANE * n_pad * 4
    # per dst row: double-buffered int8 adjacency + f32 mask-bias + ~3 live f32 e/p temps
    # + stacked normalized bf16 probabilities (heads lanes) + double-buffered 128-lane output
    per_row = n_pad * (2 * 1 + 4 + 3 * 4 + 2 * heads) + 2 * LANE * 4
    avail = max(vmem_budget - resident, 1)
    tile = avail // per_row
    return int(max(32, min(512, (tile // 32) * 32)))


def _pick_proj_tile(tile, n_pad, fin_pad, heads, vmem_budget):
    """Projection rows/step: much larger than the dst tile (no N^2 working set)."""
    per_row = 2 * (fin_pad * 4 + heads * LANE * 2 + LANE * 4)   # x + h' + alpha, double-buffered
    t = tile
    while t * 2 <= min(n_pad, 2048) and n_pad % (t * 2) == 0 and (t * 2) * per_row <= vmem_budget:
        t *= 2
    return t


# ----------------------------------------------------------------------------- kernels

def _proj_kernel(x_ref, w_ref, h_ref, al_ref, *, heads, out_ch):
    """One fused matmul: per-head feature transform + attention-logit pre-reductions."""
    x = x_ref[...].astype(jnp.float32)                                    # (T, FIN_PAD)
    full = jnp.dot(x, w_ref[...], preferred_element_type=jnp.float32)    # (T, H*C + 2H)
    hc = heads * out_ch
    al_ref[...] = full[:, hc:hc + 2 * heads]                              # [alpha_src | alpha_dst]
    for k in range(heads):                                                # static, unrolled
        h_ref[k] = full[:, k * out_ch:(k + 1) * out_ch].astype(h_ref.dtype)


def _attn_kernel(adj_ref, h_ref, al_srct_ref, al_dst_ref, b_ref, out_ref, *,
                 heads, out_ch, out_pad):
    """Masked softmax over sources + head-mean aggregation for one tile of destination rows."""
    tile = adj_ref.shape[0]
    # one additive {0, NEG_INF} mask-bias tile for all heads (no per-head cast/select)
    adj_bias = jnp.where(adj_ref[...] != 0, 0.0, NEG_INF)                 # (T, N) f32
    a_src_t = al_srct_ref[...]                                            # (2H, N)  resident
    a_dst = al_dst_ref[...]                                               # (T, 2H)  dst tile

    probs = []
    for k in range(heads):                                                # static, unrolled
        e = a_dst[:, heads + k:heads + k + 1] + a_src_t[k:k + 1, :]       # (T, N)
        e = jnp.maximum(e, LEAKY_SLOPE * e)                               # LeakyReLU(0.2)
        e = e + adj_bias                                                  # mask non-edges
        e = e - jnp.max(e, axis=-1, keepdims=True)                        # stable softmax
        p = jnp.exp(e)                                                    # masked lanes -> exactly 0
        inv = pl.reciprocal(jnp.sum(p, axis=-1, keepdims=True), approx=True)
        probs.append((p * inv).astype(h_ref.dtype))                       # normalized, bf16
    p_all = jnp.concatenate(probs, axis=-1) if heads > 1 else probs[0]    # (T, H*N)

    # single stacked-K aggregation matmul: (T, H*N) @ (H*N, C) -> (T, C)
    acc = jnp.dot(p_all, h_ref[...], preferred_element_type=jnp.float32)
    res = acc * (1.0 / heads) + b_ref[...]                                # head mean + bias
    res = jnp.where(res > 0, res, jnp.exp(jnp.minimum(res, 0.0)) - 1.0)   # F.elu (inf-safe)
    if out_pad > out_ch:                                                  # lane-dense write
        res = jnp.concatenate(
            [res, jnp.zeros((tile, out_pad - out_ch), jnp.float32)], axis=-1)
    out_ref[...] = res.astype(out_ref.dtype)


# ----------------------------------------------------------------------------- layer driver

def _gat_layer(x_pad, adj_i8, w_ext, bias, heads, out_ch, out_pad,
               tile, vmem_limit, tile_budget, out_dtype):
    n_pad, fin_pad = x_pad.shape
    wcols = w_ext.shape[1]
    proj_tile = _pick_proj_tile(tile, n_pad, fin_pad, heads, tile_budget)
    cparams = pltpu.CompilerParams(dimension_semantics=("parallel",),
                                   vmem_limit_bytes=vmem_limit)

    # --- fused projection: per-head features (bf16) + attention logits, one matmul ---
    h, alpha = pl.pallas_call(
        functools.partial(_proj_kernel, heads=heads, out_ch=out_ch),
        grid=(pl.cdiv(n_pad, proj_tile),),
        in_specs=[
            pl.BlockSpec((proj_tile, fin_pad), lambda i: (i, 0)),          # x row tile
            pl.BlockSpec((fin_pad, wcols), lambda i: (0, 0)),              # [W | a_src | a_dst] resident
        ],
        out_specs=(
            pl.BlockSpec((heads, proj_tile, out_ch), lambda i: (0, i, 0)),  # h' stacked by head
            pl.BlockSpec((proj_tile, 2 * heads), lambda i: (i, 0)),         # [alpha_src | alpha_dst]
        ),
        out_shape=(
            jax.ShapeDtypeStruct((heads, n_pad, out_ch), jnp.bfloat16),
            jax.ShapeDtypeStruct((n_pad, 2 * heads), jnp.float32),
        ),
        compiler_params=cparams,
    )(x_pad, w_ext)

    h2d = h.reshape(heads * n_pad, out_ch)   # stacked-K RHS for the single aggregation matmul
    alpha_t = alpha.T                        # (2H, N) tiny wrapper-side transpose (see TODO)

    # --- masked-softmax attention + aggregation, tiled over destination rows ---
    out = pl.pallas_call(
        functools.partial(_attn_kernel, heads=heads, out_ch=out_ch, out_pad=out_pad),
        grid=(pl.cdiv(n_pad, tile),),
        in_specs=[
            pl.BlockSpec((tile, n_pad), lambda i: (i, 0)),                 # adj dst tile (int8)
            pl.BlockSpec((heads * n_pad, out_ch), lambda i: (0, 0)),       # h' stacked (resident, bf16)
            pl.BlockSpec((2 * heads, n_pad), lambda i: (0, 0)),            # alpha^T (resident)
            pl.BlockSpec((tile, 2 * heads), lambda i: (i, 0)),             # alpha for this dst tile
            pl.BlockSpec((1, out_ch), lambda i: (0, 0)),                   # bias
        ],
        out_specs=pl.BlockSpec((tile, out_pad), lambda i: (i, 0)),         # lane-dense output
        out_shape=jax.ShapeDtypeStruct((n_pad, out_pad), out_dtype),
        compiler_params=cparams,
    )(adj_i8, h2d, alpha_t, alpha, bias)
    return out


# ----------------------------------------------------------------------------- wrapper

def build_adjacency(edge_index, num_nodes, num_nodes_pad):
    """adj[dst, src] = 1 for every edge plus self loops (PyG add_self_loops=True), int8."""
    adj = jnp.zeros((num_nodes_pad, num_nodes_pad), jnp.bool_)
    adj = adj.at[edge_index[1], edge_index[0]].set(True)
    idx = jnp.arange(num_nodes)
    adj = adj.at[idx, idx].set(True)
    return adj.astype(jnp.int8)


def _build_wext(w, att_src, att_dst, heads, out_ch, fin_pad):
    """Fold the attention vectors into W's columns: x @ [W | W_k a_src_k | W_k a_dst_k]."""
    fin = w.shape[0]
    w3 = w.reshape(fin, heads, out_ch)
    a_s = jnp.einsum("fhc,hc->fh", w3, att_src)
    a_d = jnp.einsum("fhc,hc->fh", w3, att_dst)
    ext = jnp.concatenate([w, a_s, a_d], axis=1)       # (fin, H*C + 2H)
    return jnp.pad(ext, ((0, fin_pad - fin), (0, 0)))


def gat_encoder(x, edge_index, params, heads=4):
    n, fin = x.shape
    out_ch = params["b1"].shape[-1]
    fin_pad = _round_up(fin, LANE)
    c_pad = _round_up(out_ch, LANE)

    vmem_limit, tile_budget = _vmem_budgets()
    n_pad8 = _round_up(n, SUBLANE)
    tile = _pick_dst_tile(n_pad8, heads, tile_budget)
    if tile >= n_pad8:
        tile = n_pad8
        n_pad = n_pad8
    else:
        # at least 2 dst-row grid steps so megacore ("parallel") actually shards (v7x)
        tile = min(tile, max(32, _round_up(n_pad8 // 2, 32)))
        n_pad = _round_up(n_pad8, tile)

    adj = build_adjacency(edge_index, n, n_pad)

    # layer 1 (heads=heads, concat=False -> mean over heads); bf16 activations to layer 2
    x1 = _pad2(x.astype(jnp.float32), n_pad, fin_pad)
    w1 = _build_wext(params["w1"], params["as1"], params["ad1"], heads, out_ch, fin_pad)
    h1 = _gat_layer(x1, adj, w1, params["b1"], heads, out_ch, c_pad,
                    tile, vmem_limit, tile_budget, out_dtype=jnp.bfloat16)

    # layer 2 (heads=1); h1 zero-padded to c_pad lanes, w2 rows zero-padded to match
    w2 = _build_wext(params["w2"], params["as2"], params["ad2"], 1, out_ch, c_pad)
    h2 = _gat_layer(h1, adj, w2, params["b2"], 1, out_ch, c_pad,
                    tile, vmem_limit, tile_budget, out_dtype=jnp.float32)

    return h2[:n, :out_ch]


# ----------------------------------------------------------------------------- params / reference

def init_params(key, in_channels, out_channels, heads):
    def glorot(k, shape):
        fan_in, fan_out = shape[-2], shape[-1]
        lim = jnp.sqrt(6.0 / (fan_in + fan_out))
        return jax.random.uniform(k, shape, jnp.float32, -lim, lim)

    k = jax.random.split(key, 6)
    return {
        "w1": glorot(k[0], (in_channels, heads * out_channels)),
        "as1": glorot(k[1], (heads, out_channels)),
        "ad1": glorot(k[2], (heads, out_channels)),
        "b1": jnp.zeros((1, out_channels), jnp.float32),
        "w2": glorot(k[3], (out_channels, out_channels)),
        "as2": glorot(k[4], (1, out_channels)),
        "ad2": glorot(k[5], (1, out_channels)),
        "b2": jnp.zeros((1, out_channels), jnp.float32),
    }


def gat_encoder_reference(x, edge_index, params, heads=4):
    """Pure-JAX f32 reference (exact softmax normalization, no bf16) for a sanity check."""
    n = x.shape[0]
    out_ch = params["b1"].shape[-1]
    adj = jnp.zeros((n, n), jnp.float32).at[edge_index[1], edge_index[0]].set(1.0)
    adj = jnp.maximum(adj, jnp.eye(n, dtype=jnp.float32))

    def layer(xx, w, a_s, a_d, b, h):
        hfull = xx @ w
        acc = jnp.zeros((n, out_ch), jnp.float32)
        for k in range(h):
            hk = hfull[:, k * out_ch:(k + 1) * out_ch]
            e = (hk @ a_d[k])[:, None] + (hk @ a_s[k])[None, :]
            e = jnp.where(e > 0, e, LEAKY_SLOPE * e)
            e = jnp.where(adj > 0, e, NEG_INF)
            e = e - e.max(-1, keepdims=True)
            p = jnp.exp(e) * (adj > 0)
            attn = p / p.sum(-1, keepdims=True)
            acc = acc + attn @ hk
        res = acc / h + b
        return jnp.where(res > 0, res, jnp.exp(res) - 1.0)

    h1 = layer(x, params["w1"], params["as1"], params["ad1"], params["b1"], heads)
    return layer(h1, params["w2"], params["as2"], params["ad2"], params["b2"], 1)


if __name__ == "__main__":
    N = 16          # nodes
    IN_CH = 8       # in_channels
    OUT_CH = 32     # out_channels
    HEADS = 4
    E = 40          # edges

    root = jax.random.PRNGKey(0)
    kx, ke_src, ke_dst, kp = jax.random.split(root, 4)

    x = jax.random.normal(kx, (N, IN_CH), jnp.float32)
    edge_index = jnp.stack([
        jax.random.randint(ke_src, (E,), 0, N),
        jax.random.randint(ke_dst, (E,), 0, N),
    ], axis=0).astype(jnp.int32)

    params = init_params(kp, IN_CH, OUT_CH, HEADS)

    out = jax.block_until_ready(gat_encoder(x, edge_index, params, heads=HEADS))
    ref = jax.block_until_ready(gat_encoder_reference(x, edge_index, params, heads=HEADS))

    assert out.shape == (N, OUT_CH)
    # kernel uses bf16 probabilities / features / inter-layer activations + approx reciprocal,
    # so compare against the f32 reference with a loose tolerance
    assert bool(jnp.allclose(out, ref, atol=3e-2, rtol=3e-2))

    print("KERNEL_OK")
</pallas_src>

<mosaic_0001>
module attributes {stable_mosaic.version = 11 : i64} {
  func.func @_proj_kernel(%arg0: i32, %arg1: memref<16x128xf32, #tpu.memory_space<vmem>>, %arg2: memref<128x136xf32, #tpu.memory_space<vmem>>, %arg3: memref<4x16x32xbf16, #tpu.memory_space<vmem>>, %arg4: memref<16x8xf32, #tpu.memory_space<vmem>>) attributes {dimension_semantics = [#tpu.dimension_semantics<parallel>], iteration_bounds = array<i64: 1>, scalar_prefetch = 0 : i64, scratch_operands = 0 : i64, tpu.core_type = #tpu.core_type<tc>, window_params = [{transform_indices = @transform_0, window_bounds = array<i64: 16, 128>}, {pipeline_mode = #tpu.pipeline_mode<synchronous>, transform_indices = @transform_1, window_bounds = array<i64: 128, 136>}, {transform_indices = @transform_2, window_bounds = array<i64: 4, 16, 32>}, {transform_indices = @transform_3, window_bounds = array<i64: 16, 8>}]} {
    %c0 = arith.constant 0 : index
    %c0_0 = arith.constant 0 : index
    %0 = vector.load %arg1[%c0, %c0_0] : memref<16x128xf32, #tpu.memory_space<vmem>>, vector<16x128xf32>
    %c0_1 = arith.constant 0 : index
    %c0_2 = arith.constant 0 : index
    %1 = vector.load %arg2[%c0_1, %c0_2] : memref<128x136xf32, #tpu.memory_space<vmem>>, vector<128x136xf32>
    %cst = arith.constant dense<0.000000e+00> : vector<16x136xf32>
    %2 = tpu.matmul %0, %1, %cst {dimension_numbers = #tpu.dot_dimension_numbers<[1], [0], [0], [1], [0, 0, 1, 1], [], []>} : vector<16x128xf32>, vector<128x136xf32>, vector<16x136xf32> -> vector<16x136xf32>
    %3 = vector.extract_strided_slice %2 {offsets = [0, 128], sizes = [16, 8], strides = [1, 1]} : vector<16x136xf32> to vector<16x8xf32>
    %c0_3 = arith.constant 0 : index
    %c0_4 = arith.constant 0 : index
    %4 = vector.load %arg4[%c0_3, %c0_4] : memref<16x8xf32, #tpu.memory_space<vmem>>, vector<16x8xf32>
    tpu.vector_store %arg4[%c0_3, %c0_4], %3 {strides = array<i32>} : memref<16x8xf32, #tpu.memory_space<vmem>>, vector<16x8xf32>,
    %5 = vector.extract_strided_slice %2 {offsets = [0, 0], sizes = [16, 32], strides = [1, 1]} : vector<16x136xf32> to vector<16x32xf32>
    %6 = arith.truncf %5 : vector<16x32xf32> to vector<16x32xbf16>
    %c0_5 = arith.constant 0 : index
    %c0_6 = arith.constant 0 : index
    %c0_7 = arith.constant 0 : index
    %7 = vector.load %arg3[%c0_5, %c0_6, %c0_7] : memref<4x16x32xbf16, #tpu.memory_space<vmem>>, vector<1x16x32xbf16>
    %8 = vector.shape_cast %7 : vector<1x16x32xbf16> to vector<16x32xbf16>
    %9 = vector.shape_cast %6 : vector<16x32xbf16> to vector<1x16x32xbf16>
    tpu.vector_store %arg3[%c0_5, %c0_6, %c0_7], %9 {strides = array<i32>} : memref<4x16x32xbf16, #tpu.memory_space<vmem>>, vector<1x16x32xbf16>,
    %10 = vector.extract_strided_slice %2 {offsets = [0, 32], sizes = [16, 32], strides = [1, 1]} : vector<16x136xf32> to vector<16x32xf32>
    %11 = arith.truncf %10 : vector<16x32xf32> to vector<16x32xbf16>
    %c1 = arith.constant 1 : index
    %c0_8 = arith.constant 0 : index
    %c0_9 = arith.constant 0 : index
    %12 = vector.load %arg3[%c1, %c0_8, %c0_9] : memref<4x16x32xbf16, #tpu.memory_space<vmem>>, vector<1x16x32xbf16>
    %13 = vector.shape_cast %12 : vector<1x16x32xbf16> to vector<16x32xbf16>
    %14 = vector.shape_cast %11 : vector<16x32xbf16> to vector<1x16x32xbf16>
    tpu.vector_store %arg3[%c1, %c0_8, %c0_9], %14 {strides = array<i32>} : memref<4x16x32xbf16, #tpu.memory_space<vmem>>, vector<1x16x32xbf16>,
    %15 = vector.extract_strided_slice %2 {offsets = [0, 64], sizes = [16, 32], strides = [1, 1]} : vector<16x136xf32> to vector<16x32xf32>
    %16 = arith.truncf %15 : vector<16x32xf32> to vector<16x32xbf16>
    %c2 = arith.constant 2 : index
    %c0_10 = arith.constant 0 : index
    %c0_11 = arith.constant 0 : index
    %17 = vector.load %arg3[%c2, %c0_10, %c0_11] : memref<4x16x32xbf16, #tpu.memory_space<vmem>>, vector<1x16x32xbf16>
    %18 = vector.shape_cast %17 : vector<1x16x32xbf16> to vector<16x32xbf16>
    %19 = vector.shape_cast %16 : vector<16x32xbf16> to vector<1x16x32xbf16>
    tpu.vector_store %arg3[%c2, %c0_10, %c0_11], %19 {strides = array<i32>} : memref<4x16x32xbf16, #tpu.memory_space<vmem>>, vector<1x16x32xbf16>,
    %20 = vector.extract_strided_slice %2 {offsets = [0, 96], sizes = [16, 32], strides = [1, 1]} : vector<16x136xf32> to vector<16x32xf32>
    %21 = arith.truncf %20 : vector<16x32xf32> to vector<16x32xbf16>
    %c3 = arith.constant 3 : index
    %c0_12 = arith.constant 0 : index
    %c0_13 = arith.constant 0 : index
    %22 = vector.load %arg3[%c3, %c0_12, %c0_13] : memref<4x16x32xbf16, #tpu.memory_space<vmem>>, vector<1x16x32xbf16>
    %23 = vector.shape_cast %22 : vector<1x16x32xbf16> to vector<16x32xbf16>
    %24 = vector.shape_cast %21 : vector<16x32xbf16> to vector<1x16x32xbf16>
    tpu.vector_store %arg3[%c3, %c0_12, %c0_13], %24 {strides = array<i32>} : memref<4x16x32xbf16, #tpu.memory_space<vmem>>, vector<1x16x32xbf16>,
    return
  }
  func.func @transform_0(%arg0: i32) -> (i32, i32) {
    %c0_i32 = arith.constant 0 : i32
    %c0_i32_0 = arith.constant 0 : i32
    return %arg0, %c0_i32 : i32, i32
  }
  func.func @transform_1(%arg0: i32) -> (i32, i32) {
    %c0_i32 = arith.constant 0 : i32
    %c0_i32_0 = arith.constant 0 : i32
    %c0_i32_1 = arith.constant 0 : i32
    return %c0_i32, %c0_i32_0 : i32, i32
  }
  func.func @transform_2(%arg0: i32) -> (i32, i32, i32) {
    %c0_i32 = arith.constant 0 : i32
    %c0_i32_0 = arith.constant 0 : i32
    %c0_i32_1 = arith.constant 0 : i32
    return %c0_i32, %arg0, %c0_i32_0 : i32, i32, i32
  }
  func.func @transform_3(%arg0: i32) -> (i32, i32) {
    %c0_i32 = arith.constant 0 : i32
    %c0_i32_0 = arith.constant 0 : i32
    return %arg0, %c0_i32 : i32, i32
  }
}

</mosaic_0001>

<bundles_post_ra>
// kernel: tpu_custom_call.1
= control target key start
LH: loop header
LB: loop body
LE: loop exit
PB: predicated region body
PF: predicated region fallthrough
CT: control target
= control target key end

     0   :  { %v268_v7 = vmov 0.0   ;;  %s426_s0 = inlined_call_operand.vmem [shape: f32[16,128], index: 0, kind: input, shape index: {}]   ;;  %s427_s1 = inlined_call_operand.vmem [shape: f32[128,136], index: 1, kind: input, shape index: {}]   ;;  %s428_s2 = inlined_call_operand.hbm [shape: bf16[4,16,32], index: 2, kind: output, shape index: {0}]   ;;  %s429_s3 = inlined_call_operand.vmem [shape: f32[16,8], index: 3, kind: output, shape index: {1}]  }
   0x1   :  { %v17_v0 = vld [vmem:[%s427_s1 + $0x8] sm:$0xff]  ;;  %v19_v1 = vld [vmem:[%s427_s1 + $0x18] sm:$0xff]  ;;  %v16_v2 = vld [vmem:[%s427_s1] sm:$0xff]  ;;  %112 = vmatprep.mubr.f32.mxu0 %v268_v7  ;;  %118 = vmatprep.mubr.f32.mxu1 %v268_v7 }
   0x2   :  { %v190_v3 = vpack.c.bf16 %v19_v1, %v17_v0  ;;  %v18_v4 = vld [vmem:[%s427_s1 + $0x10] sm:$0xff]  ;;  %v21_v5 = vld [vmem:[%s427_s1 + $0x28] sm:$0xff]  ;;  %v23_v6 = vld [vmem:[%s427_s1 + $0x38] sm:$0xff] }
   0x3   :  { %v192_v8 = vpack.c.bf16 %v18_v4, %v16_v2  ;;  %v194_v9 = vpack.c.bf16 %v23_v6, %v21_v5  ;;  %v20_v10 = vld [vmem:[%s427_s1 + $0x20] sm:$0xff]  ;;  %v22_v11 = vld [vmem:[%s427_s1 + $0x30] sm:$0xff]  ;;  %v25_v12 = vld [vmem:[%s427_s1 + $0x48] sm:$0xff] }
   0x4   :  { %191 = vmatprep.subr.bf16.mxu0 %v190_v3  ;;  %222 = vmatprep.subr.bf16.mxu1 %v190_v3  ;;  %v27_v13 = vld [vmem:[%s427_s1 + $0x58] sm:$0xff]  ;;  %v196_v14 = vpack.c.bf16 %v22_v11, %v20_v10  ;;  %v24_v16 = vld [vmem:[%s427_s1 + $0x40] sm:$0xff]  ;;  %v26_v17 = vld [vmem:[%s427_s1 + $0x50] sm:$0xff] }
   0x5   :  { %193 = vmatpush1.bf16.msra.mxu0 %v192_v8  ;;  %230 = vmatpush1.bf16.msra.mxu1 %v192_v8  ;;  %v198_v15 = vpack.c.bf16 %v27_v13, %v25_v12  ;;  %v29_v18 = vld [vmem:[%s427_s1 + $0x68] sm:$0xff]  ;;  %v31_v19 = vld [vmem:[%s427_s1 + $0x78] sm:$0xff]  ;;  %v200_v20 = vpack.c.bf16 %v26_v17, %v24_v16  ;;  %v28_v22 = vld [vmem:[%s427_s1 + $0x60] sm:$0xff] }
   0x6   :  { %195 = vmatprep.subr.bf16.mxu0 %v194_v9  ;;  %223 = vmatprep.subr.bf16.mxu1 %v194_v9  ;;  %v202_v21 = vpack.c.bf16 %v31_v19, %v29_v18  ;;  %v30_v23 = vld [vmem:[%s427_s1 + $0x70] sm:$0xff]  ;;  %v33_v24 = vld [vmem:[%s427_s1 + $0x88] sm:$0xff]  ;;  %v35_v25 = vld [vmem:[%s427_s1 + $0x98] sm:$0xff] }
   0x9   :  { %197 = vmatpush1.bf16.msra.mxu0 %v196_v14  ;;  %231 = vmatpush1.bf16.msra.mxu1 %v196_v14 }
   0xa   :  { %199 = vmatprep.subr.bf16.mxu0 %v198_v15  ;;  %224 = vmatprep.subr.bf16.mxu1 %v198_v15 }
   0xb   :  { %9 = vsyncpa [#allocation3], 0  ;;  %v204_v26 = vpack.c.bf16 %v30_v23, %v28_v22  ;;  %v206_v27 = vpack.c.bf16 %v35_v25, %v33_v24  ;;  %v32_v28 = vld [vmem:[%s427_s1 + $0x80] sm:$0xff]  ;;  %v34_v29 = vld [vmem:[%s427_s1 + $0x90] sm:$0xff]  ;;  %vm125_vm0 = vcmask 64512   ;;  %vm136_vm1 = vcmask 257024  }
   0xc   :  { %v37_v30 = vld [vmem:[%s427_s1 + $0xa8] sm:$0xff]  ;;  %v39_v31 = vld [vmem:[%s427_s1 + $0xb8] sm:$0xff]  ;;  %v208_v32 = vpack.c.bf16 %v34_v29, %v32_v28  ;;  %v36_v34 = vld [vmem:[%s427_s1 + $0xa0] sm:$0xff]  ;;  %s270_s29 = smov 96   ;;  %s271_s30 = smov 32  }
   0xd   :  { %201 = vmatpush1.bf16.msra.mxu0 %v200_v20  ;;  %232 = vmatpush1.bf16.msra.mxu1 %v200_v20  ;;  %v210_v33 = vpack.c.bf16 %v39_v31, %v37_v30  ;;  %v38_v35 = vld [vmem:[%s427_s1 + $0xb0] sm:$0xff]  ;;  %v41_v36 = vld [vmem:[%s427_s1 + $0xc8] sm:$0xff]  ;;  %v43_v37 = vld [vmem:[%s427_s1 + $0xd8] sm:$0xff] }
   0xe   :  { %203 = vmatprep.subr.bf16.mxu0 %v202_v21  ;;  %225 = vmatprep.subr.bf16.mxu1 %v202_v21  ;;  %v212_v38 = vpack.c.bf16 %v38_v35, %v36_v34  ;;  %v214_v39 = vpack.c.bf16 %v43_v37, %v41_v36  ;;  %v40_v40 = vld [vmem:[%s427_s1 + $0xc0] sm:$0xff]  ;;  %v42_v41 = vld [vmem:[%s427_s1 + $0xd0] sm:$0xff]  ;;  %v45_v42 = vld [vmem:[%s427_s1 + $0xe8] sm:$0xff] }
   0xf   :  { %v47_v43 = vld [vmem:[%s427_s1 + $0xf8] sm:$0xff]  ;;  %v216_v44 = vpack.c.bf16 %v42_v41, %v40_v40  ;;  %v44_v46 = vld [vmem:[%s427_s1 + $0xe0] sm:$0xff]  ;;  %v46_v47 = vld [vmem:[%s427_s1 + $0xf0] sm:$0xff] }
  0x10   :  { %v218_v45 = vpack.c.bf16 %v47_v43, %v45_v42  ;;  %v220_v48 = vpack.c.bf16 %v46_v47, %v44_v46  ;;  %v14_v49 = vld [vmem:[%s426_s0] sm:$0xff]  ;;  %v15_v50 = vld [vmem:[%s426_s0 + $0x8] sm:$0xff]  ;;  %s269_s0 = smov 64  }
  0x11   :  { %205 = vmatpush1.bf16.msra.mxu0 %v204_v26  ;;  %233 = vmatpush1.bf16.msra.mxu1 %v204_v26 }
  0x12   :  { %207 = vmatprep.subr.bf16.mxu0 %v206_v27  ;;  %226 = vmatprep.subr.bf16.mxu1 %v206_v27 }
  0x15   :  { %209 = vmatpush1.bf16.msra.mxu0 %v208_v32  ;;  %234 = vmatpush1.bf16.msra.mxu1 %v208_v32 }
  0x16   :  { %211 = vmatprep.subr.bf16.mxu0 %v210_v33  ;;  %227 = vmatprep.subr.bf16.mxu1 %v210_v33 }
  0x19   :  { %213 = vmatpush1.bf16.msra.mxu0 %v212_v38  ;;  %235 = vmatpush1.bf16.msra.mxu1 %v212_v38 }
  0x1a   :  { %215 = vmatprep.subr.bf16.mxu0 %v214_v39  ;;  %228 = vmatprep.subr.bf16.mxu1 %v214_v39 }
  0x1d   :  { %217 = vmatpush1.bf16.msra.mxu0 %v216_v44  ;;  %236 = vmatpush1.bf16.msra.mxu1 %v216_v44 }
  0x1e   :  { %219 = vmatprep.subr.bf16.mxu0 %v218_v45  ;;  %229 = vmatprep.subr.bf16.mxu1 %v218_v45 }
  0x21   :  { %221 = vmatpush1.bf16.msra.mxu0 %v220_v48  ;;  %237 = vmatpush1.bf16.msra.mxu1 %v220_v48 }
  0x24   :  { %113 = vmatmul.mubr.f32.vlgmr.msra.gmra.mrb[0].mxu0 %v14_v49  ;;  %119 = vmatmul.mubr.f32.vlgmr.msra.gmra.mrb[0].mxu1 %v15_v50 }
  0xf7   :  { %v114_v51 = vpop.f32.mrb[0].mxu0  ;;  %v120_v52 = vpop.f32.mrb[0].mxu1 }
  0xf8   :  { %v188_v53 = vpack.c.bf16 %v114_v51, %v114_v51  ;;  %v116_v54 = vpop.f32.mrb[1].mxu0  ;;  %v189_v55 = vpack.c.bf16 %v120_v52, %v120_v52  ;;  %v122_v56 = vpop.f32.mrb[1].mxu1 }
  0xf9   :  { %126 = vst.msk [vmem:[%s429_s3] sm:$0xff] %vm125_vm0, %v116_v54  ;;  %127 = vst.msk [vmem:[%s429_s3 + $0x8] sm:$0xff] %vm125_vm0, %v122_v56  ;;  %s272_s3 = smov [#allocation2]  }
  0xfa   :  { %137 = vst.msk [vmem:[#allocation2] sm:$0xf] %vm136_vm1, %v188_v53  ;;  %138 = vst.msk [vmem:[#allocation2 + $0x4] sm:$0xf] %vm136_vm1, %v189_v55  ;;  %148 = vrot.lane.b32.xlu1 %v188_v53, %s269_s0  ;;  %139 = vrot.lane.b32.xlu0 %v188_v53, %s270_s29  ;;  %s171_s4 = sshll.u32 %s272_s3, 4  ;;  %s172_s4 = int_to_ptr.vmem [resolvable:$true] %s171_s4 }
  0xfb   :  { %s244_s5 = scalar_lea.vmem %s172_s4, 512  ;;  %p249_p1 = scmp.lt.s32.totalorder %s172_s4, %s172_s4 }
  0xfc   :  { %p245_p0 = scmp.ne.s32.totalorder %s172_s4, %s244_s5  ;;  %p250_p2 = scmp.lt.s32.totalorder %s244_s5, %s244_s5 }
  0xfe   :  { %150 = vrot.lane.b32.xlu1 %v189_v55, %s269_s0  ;;  %141 = vrot.lane.b32.xlu0 %v189_v55, %s270_s29  ;;  %p251_p3 = por %p250_p2, %p249_p1 }
 0x100   :  { %p252_p4 = pnand %p251_p3, %p245_p0 }
 0x102   :  { %159 = vrot.lane.b32.xlu1 %v189_v55, %s271_s30  ;;  %157 = vrot.lane.b32.xlu0 %v188_v53, %s271_s30 }
 0x16c   :  { %v149_v57 = vpop.permute.xlu1 %148  ;;  %v140_v58 = vpop.permute.xlu0 %139 }
 0x16d   :  { %155 = vst.msk [vmem:[#allocation2 + $0x10] sm:$0xf] %vm136_vm1, %v149_v57  ;;  %146 = vst.msk [vmem:[#allocation2 + $0x8] sm:$0xf] %vm136_vm1, %v140_v58 }
 0x170   :  { %v151_v59 = vpop.permute.xlu1 %150  ;;  %v142_v60 = vpop.permute.xlu0 %141 }
 0x171   :  { %156 = vst.msk [vmem:[#allocation2 + $0x14] sm:$0xf] %vm136_vm1, %v151_v59  ;;  %147 = vst.msk [vmem:[#allocation2 + $0xc] sm:$0xf] %vm136_vm1, %v142_v60 }
 0x174   :  { %v160_v61 = vpop.permute.xlu1 %159  ;;  %v158_v62 = vpop.permute.xlu0 %157 }
 0x175   :  { %165 = vst.msk [vmem:[#allocation2 + $0x1c] sm:$0xf] %vm136_vm1, %v160_v61  ;;  %164 = vst.msk [vmem:[#allocation2 + $0x18] sm:$0xf] %vm136_vm1, %v158_v62 }
 0x176   :  { %255 = shalt.err (!%p252_p4)
}
 0x177   :  { %s256_s8 = scalar_lea.hbm %s428_s2, 512 }
 0x178   :  { %p257_p5 = scmp.ne.s32.totalorder %s428_s2, %s256_s8  ;;  %p260_p6 = scmp.lt.u32.totalorder %s256_s8, %s428_s2 }
 0x17a   :  { %p262_p7 = pnand %p260_p6, %p257_p5 }
 0x17c   :  { %265 = shalt.err (!%p262_p7)
}
 0x17d   :  { %s273_s13 = smov 4  }
 0x17e   :  { %177 = dma.vmem_to_hbm [thread:$0]  %s172_s4, 512, %s428_s2, [#allocation3], %s269_s0, %s269_s0, %s273_s13  }
 0x17f   :  { %266 = dma.done.wait [#allocation3], 512  }
 0x180   :  { %267 = vsyncadd [#allocation3], 4294966784 }
 0x181   :  { %185 = vsyncpa [#allocation3], 1 }

</bundles_post_ra>
